<compile_context>
chip_gen: v6e
topology: v6e:2x2x1
jax: 0.10.0
libtpu: 0.0.40
codegen_flags: <defaults>
</compile_context>

<pallas_src>
import jax
import jax.numpy as jnp
import numpy as np
from jax.experimental import pallas as pl
from jax.experimental.pallas import tpu as pltpu


def _round_up(n: int, m: int) -> int:
    return (n + m - 1) // m * m


# ----------------------------------------------------------------------------
# Pallas kernel
# ----------------------------------------------------------------------------
def cat_embed_kernel(idx_ref, table_ref, bias_ref, out_ref):
    """Fused categorical-embedding lookup + bias add, one matmul / one store.

    idx_ref:   (B_TILE, F)    int32  offset-folded per-feature category indices
    table_ref: (V_pad, F*D)   f32    block-diagonal packed embedding tables
    bias_ref:  (1, F*D)       f32    flattened per-feature bias (zeros if bias=False)
    out_ref:   (B_TILE, F*D)  f32    row b = concat_f( table_f[idx[b,f]] + bias_f )
    """
    bt, n_feat = idx_ref.shape
    v_pad = table_ref.shape[0]

    idx = idx_ref[...]                                         # (B_TILE, F)
    iota = jax.lax.broadcasted_iota(jnp.int32, (bt, v_pad), 1)

    # One one-hot with F ones per row; feature ranges are disjoint so summing
    # the per-feature compares is exact.  F is small -> static unroll is cheap
    # VPU work; the single matmul below does all F gathers at once.
    onehot = (iota == idx[:, 0:1]).astype(jnp.float32)
    for fi in range(1, n_feat):
        onehot = onehot + (iota == idx[:, fi:fi + 1]).astype(jnp.float32)

    # Block-diagonal table => one (B_TILE, V_pad) @ (V_pad, F*D) matmul yields
    # the already-concatenated output slab.  HIGHEST precision keeps the f32
    # table values bit-exact through the MXU passes.
    emb = jnp.dot(onehot, table_ref[...],
                  preferred_element_type=jnp.float32,
                  precision=jax.lax.Precision.HIGHEST)         # (B_TILE, F*D)
    out_ref[...] = emb + bias_ref[...]                         # one full-width store


# ----------------------------------------------------------------------------
# One-time host-side prep
# ----------------------------------------------------------------------------
def pack_tables(tables):
    """Pack per-feature tables into a block-diagonal (V_pad, F*D) matrix.

    Returns (packed_table, offsets[F] int32, cardinalities[F] int32).
    Feature f's rows occupy columns f*D:(f+1)*D; rows are padded to a multiple
    of 8 for sublane alignment (padded rows are all-zero and never selected).
    """
    cards = [int(t.shape[0]) for t in tables]
    n_feat = len(tables)
    d = int(tables[0].shape[1])
    offsets = np.cumsum([0] + cards[:-1]).astype(np.int32)     # (F,)
    v = int(sum(cards))
    v_pad = _round_up(max(v, 8), 8)

    packed = jnp.zeros((v_pad, n_feat * d), jnp.float32)
    row = 0
    for fi, t in enumerate(tables):
        c = int(t.shape[0])
        packed = packed.at[row:row + c, fi * d:(fi + 1) * d].set(
            t.astype(jnp.float32))
        row += c
    return packed, jnp.asarray(offsets, jnp.int32), jnp.asarray(cards, jnp.int32)


# ----------------------------------------------------------------------------
# Forward wrapper
# ----------------------------------------------------------------------------
def categorical_embeddings_forward(x, packed_table, offsets, cards, bias,
                                   *, b_tile=512):
    """x: (..., F) integer indices -> (..., F, D) float32 embeddings (+ bias)."""
    n_feat = x.shape[-1]
    lead = x.shape[:-1]
    v_pad, fd = packed_table.shape
    d = fd // n_feat

    bias_flat = bias.reshape(1, fd).astype(jnp.float32)        # (1, F*D)

    x2 = x.reshape(-1, n_feat).astype(jnp.int32)               # (B, F)
    x2 = jnp.clip(x2, 0, cards - 1)                            # guard OOB indices
    x2 = x2 + offsets                                          # fold row offsets (XLA)
    batch = x2.shape[0]

    bt = max(128, _round_up(min(b_tile, batch), 128))          # MXU-friendly M
    b_pad = _round_up(batch, bt)
    if b_pad != batch:
        x2 = jnp.pad(x2, ((0, b_pad - batch), (0, 0)))         # pad rows hit row 0

    # Explicit VMEM budget: lane-padded, double-buffered operands + headroom.
    def _padded_bytes(rows, cols, itemsize=4):
        return _round_up(rows, 8) * _round_up(cols, 128) * itemsize
    vmem_bytes = 2 * (_padded_bytes(bt, n_feat)                # idx tile
                      + _padded_bytes(v_pad, fd)               # packed table
                      + _padded_bytes(1, fd)                   # bias
                      + _padded_bytes(bt, fd))                 # output tile
    vmem_bytes += _padded_bytes(bt, v_pad)                     # in-kernel one-hot
    vmem_bytes = min(max(vmem_bytes + (2 << 20), 4 << 20), 64 << 20)

    out = pl.pallas_call(
        cat_embed_kernel,
        out_shape=jax.ShapeDtypeStruct((b_pad, fd), jnp.float32),
        grid=(b_pad // bt,),
        in_specs=[
            pl.BlockSpec((bt, n_feat), lambda b: (b, 0)),      # index tile
            pl.BlockSpec((v_pad, fd), lambda b: (0, 0)),       # block-diag table
            pl.BlockSpec((1, fd), lambda b: (0, 0)),           # flattened bias
        ],
        out_specs=pl.BlockSpec((bt, fd), lambda b: (b, 0)),
        compiler_params=pltpu.CompilerParams(
            dimension_semantics=("parallel",),
            vmem_limit_bytes=vmem_bytes),
    )(x2, packed_table, bias_flat)

    return out[:batch].reshape(*lead, n_feat, d)


# ----------------------------------------------------------------------------
# Deterministic parameters (matches CategoricalEmbeddings.reset_parameters)
# ----------------------------------------------------------------------------
def init_params(key, cardinalities, d_embedding, bias=True):
    d_rsqrt = d_embedding ** -0.5
    keys = jax.random.split(key, len(cardinalities) + 1)
    tables = [jax.random.uniform(keys[i], (c, d_embedding), jnp.float32,
                                 -d_rsqrt, d_rsqrt)
              for i, c in enumerate(cardinalities)]
    if bias:
        b = jax.random.uniform(keys[-1], (len(cardinalities), d_embedding),
                               jnp.float32, -d_rsqrt, d_rsqrt)
    else:
        b = jnp.zeros((len(cardinalities), d_embedding), jnp.float32)
    return tables, b


# ----------------------------------------------------------------------------
# Pure-JAX reference (same math as the PyTorch module)
# ----------------------------------------------------------------------------
def reference_forward(x, tables, bias):
    embs = [jnp.take(tables[i], x[..., i], axis=0) for i in range(len(tables))]
    out = jnp.stack(embs, axis=-2)        # torch.stack(..., dim=-2)
    return out + bias


if __name__ == "__main__":
    key = jax.random.PRNGKey(0)
    pkey, xkey = jax.random.split(key)

    cardinalities = [3, 10, 7, 16]        # 4 categorical features
    d_embedding = 8
    batch = 16

    tables, bias = init_params(pkey, cardinalities, d_embedding, bias=True)
    packed_table, offsets, cards = pack_tables(tables)

    xkeys = jax.random.split(xkey, len(cardinalities))
    x = jnp.stack([jax.random.randint(xkeys[i], (batch,), 0, c, dtype=jnp.int32)
                   for i, c in enumerate(cardinalities)], axis=-1)   # (B, F)

    out = categorical_embeddings_forward(x, packed_table, offsets, cards, bias)
    out = jax.block_until_ready(out)
    assert out.shape == (batch, len(cardinalities), d_embedding)

    ref = reference_forward(x, tables, bias)
    np.testing.assert_allclose(np.asarray(out), np.asarray(ref),
                               rtol=1e-6, atol=1e-6)

    print("KERNEL_OK")
</pallas_src>

<mosaic_0001>
module attributes {stable_mosaic.version = 11 : i64} {
  func.func @cat_embed_kernel(%arg0: i32, %arg1: memref<128x4xi32, #tpu.memory_space<vmem>>, %arg2: memref<40x32xf32, #tpu.memory_space<vmem>>, %arg3: memref<1x32xf32, #tpu.memory_space<vmem>>, %arg4: memref<128x32xf32, #tpu.memory_space<vmem>>) attributes {dimension_semantics = [#tpu.dimension_semantics<parallel>], iteration_bounds = array<i64: 1>, scalar_prefetch = 0 : i64, scratch_operands = 0 : i64, tpu.core_type = #tpu.core_type<tc>, window_params = [{transform_indices = @transform_0, window_bounds = array<i64: 128, 4>}, {pipeline_mode = #tpu.pipeline_mode<synchronous>, transform_indices = @transform_1, window_bounds = array<i64: 40, 32>}, {pipeline_mode = #tpu.pipeline_mode<synchronous>, transform_indices = @transform_2, window_bounds = array<i64: 1, 32>}, {transform_indices = @transform_3, window_bounds = array<i64: 128, 32>}]} {
    %c0 = arith.constant 0 : index
    %c0_0 = arith.constant 0 : index
    %0 = vector.load %arg1[%c0, %c0_0] : memref<128x4xi32, #tpu.memory_space<vmem>>, vector<128x4xi32>
    %1 = tpu.iota {dimensions = array<i32: 1>} : vector<128x40xi32>
    %2 = vector.extract_strided_slice %0 {offsets = [0, 0], sizes = [128, 1], strides = [1, 1]} : vector<128x4xi32> to vector<128x1xi32>
    %3 = vector.broadcast %2 : vector<128x1xi32> to vector<128x40xi32>
    %4 = arith.cmpi eq, %1, %3 : vector<128x40xi32>
    %5 = arith.extui %4 : vector<128x40xi1> to vector<128x40xi32>
    %6 = arith.sitofp %5 : vector<128x40xi32> to vector<128x40xf32>
    %7 = vector.extract_strided_slice %0 {offsets = [0, 1], sizes = [128, 1], strides = [1, 1]} : vector<128x4xi32> to vector<128x1xi32>
    %8 = vector.broadcast %7 : vector<128x1xi32> to vector<128x40xi32>
    %9 = arith.cmpi eq, %1, %8 : vector<128x40xi32>
    %10 = arith.extui %9 : vector<128x40xi1> to vector<128x40xi32>
    %11 = arith.sitofp %10 : vector<128x40xi32> to vector<128x40xf32>
    %12 = arith.addf %6, %11 : vector<128x40xf32>
    %13 = vector.extract_strided_slice %0 {offsets = [0, 2], sizes = [128, 1], strides = [1, 1]} : vector<128x4xi32> to vector<128x1xi32>
    %14 = vector.broadcast %13 : vector<128x1xi32> to vector<128x40xi32>
    %15 = arith.cmpi eq, %1, %14 : vector<128x40xi32>
    %16 = arith.extui %15 : vector<128x40xi1> to vector<128x40xi32>
    %17 = arith.sitofp %16 : vector<128x40xi32> to vector<128x40xf32>
    %18 = arith.addf %12, %17 : vector<128x40xf32>
    %19 = vector.extract_strided_slice %0 {offsets = [0, 3], sizes = [128, 1], strides = [1, 1]} : vector<128x4xi32> to vector<128x1xi32>
    %20 = vector.broadcast %19 : vector<128x1xi32> to vector<128x40xi32>
    %21 = arith.cmpi eq, %1, %20 : vector<128x40xi32>
    %22 = arith.extui %21 : vector<128x40xi1> to vector<128x40xi32>
    %23 = arith.sitofp %22 : vector<128x40xi32> to vector<128x40xf32>
    %24 = arith.addf %18, %23 : vector<128x40xf32>
    %c0_1 = arith.constant 0 : index
    %c0_2 = arith.constant 0 : index
    %25 = vector.load %arg2[%c0_1, %c0_2] : memref<40x32xf32, #tpu.memory_space<vmem>>, vector<40x32xf32>
    %cst = arith.constant dense<0.000000e+00> : vector<128x32xf32>
    %26 = tpu.matmul %24, %25, %cst {dimension_numbers = #tpu.dot_dimension_numbers<[1], [0], [0], [1], [0, 0, 1, 1], [], []>, precision = #tpu.contract_precision<fp32>} : vector<128x40xf32>, vector<40x32xf32>, vector<128x32xf32> -> vector<128x32xf32>
    %c0_3 = arith.constant 0 : index
    %c0_4 = arith.constant 0 : index
    %27 = vector.load %arg3[%c0_3, %c0_4] : memref<1x32xf32, #tpu.memory_space<vmem>>, vector<1x32xf32>
    %28 = vector.broadcast %27 : vector<1x32xf32> to vector<128x32xf32>
    %29 = arith.addf %26, %28 : vector<128x32xf32>
    %c0_5 = arith.constant 0 : index
    %c0_6 = arith.constant 0 : index
    %30 = vector.load %arg4[%c0_5, %c0_6] : memref<128x32xf32, #tpu.memory_space<vmem>>, vector<128x32xf32>
    tpu.vector_store %arg4[%c0_5, %c0_6], %29 {strides = array<i32>} : memref<128x32xf32, #tpu.memory_space<vmem>>, vector<128x32xf32>,
    return
  }
  func.func @transform_0(%arg0: i32) -> (i32, i32) {
    %c0_i32 = arith.constant 0 : i32
    %c0_i32_0 = arith.constant 0 : i32
    return %arg0, %c0_i32 : i32, i32
  }
  func.func @transform_1(%arg0: i32) -> (i32, i32) {
    %c0_i32 = arith.constant 0 : i32
    %c0_i32_0 = arith.constant 0 : i32
    %c0_i32_1 = arith.constant 0 : i32
    return %c0_i32, %c0_i32_0 : i32, i32
  }
  func.func @transform_2(%arg0: i32) -> (i32, i32) {
    %c0_i32 = arith.constant 0 : i32
    %c0_i32_0 = arith.constant 0 : i32
    %c0_i32_1 = arith.constant 0 : i32
    return %c0_i32, %c0_i32_0 : i32, i32
  }
  func.func @transform_3(%arg0: i32) -> (i32, i32) {
    %c0_i32 = arith.constant 0 : i32
    %c0_i32_0 = arith.constant 0 : i32
    return %arg0, %c0_i32 : i32, i32
  }
}

</mosaic_0001>

<bundles_post_ra>
// kernel: tpu_custom_call.1
= control target key start
LH: loop header
LB: loop body
LE: loop exit
PB: predicated region body
PF: predicated region fallthrough
CT: control target
= control target key end

     0   :  { %v2133_v0 = vmov 0   ;;  %v2134_v3 = vmov 1   ;;  %v2135_v4 = vmov 2   ;;  %v2136_v5 = vmov 3   ;;  %s3115_s0 = inlined_call_operand.vmem [shape: s32[128,4], index: 0, kind: input, shape index: {}]   ;;  %s3116_s1 = inlined_call_operand.vmem [shape: f32[40,32], index: 1, kind: input, shape index: {}]   ;;  %s3117_s2 = inlined_call_operand.vmem [shape: f32[1,32], index: 2, kind: input, shape index: {}]   ;;  %s3118_s3 = inlined_call_operand.vmem [shape: f32[128,32], index: 3, kind: output, shape index: {}]  }
   0x1   :  { %2091 = vset.pattern.permute.xlu1 %v2133_v0  ;;  %2089 = vset.pattern.permute.xlu0 %v2133_v0  ;;  %v2163_v1 = vld [vmem:[%s3115_s0 + $0x8] sm:$0xff]  ;;  %v14_v2 = vld [vmem:[%s3115_s0] sm:$0xff]  ;;  %v16_v6 = vld [vmem:[%s3115_s0 + $0x10] sm:$0xff]  ;;  %v30_v49 = vlaneseq  ;;  %v2137_v55 = vmov 0.0   ;;  %vm476_vm4 = vcmask 326656  }
   0x2   :  { %36 = vperm.xlu1 %2091, %v2163_v1   ;;  %33 = vperm.xlu0 %2089, %v14_v2   ;;  %v2183_v7 = vld [vmem:[%s3115_s0 + $0x18] sm:$0xff]  ;;  %v18_v8 = vld [vmem:[%s3115_s0 + $0x20] sm:$0xff]  ;;  %v2194_v9 = vld [vmem:[%s3115_s0 + $0x28] sm:$0xff] }
   0x3   :  { %v2202_v10 = vld [vmem:[%s3115_s0 + $0x30] sm:$0xff]  ;;  %v2209_v11 = vld [vmem:[%s3115_s0 + $0x38] sm:$0xff]  ;;  %v2216_v12 = vld [vmem:[%s3115_s0 + $0x40] sm:$0xff]  ;;  %v2373_v52 = vand.u32 127, %v30_v49 }
   0x4   :  { %v2222_v13 = vld [vmem:[%s3115_s0 + $0x48] sm:$0xff]  ;;  %v2229_v14 = vld [vmem:[%s3115_s0 + $0x50] sm:$0xff]  ;;  %v2237_v15 = vld [vmem:[%s3115_s0 + $0x58] sm:$0xff] }
   0x5   :  { %v468_v16 = vld [vmem:[%s3116_s1 + $0x20] sm:$0xff]  ;;  %v467_v18 = vld [vmem:[%s3116_s1 + $0x18] sm:$0xff]  ;;  %v466_v22 = vld [vmem:[%s3116_s1 + $0x10] sm:$0xff] }
   0x6   :  { %2092 = vset.pattern.permute.xlu1 %v2134_v3  ;;  %2090 = vset.pattern.permute.xlu0 %v2134_v3  ;;  %v2242_v17 = vand.u32 4294901760, %v468_v16  ;;  %v2252_v20 = vand.u32 4294901760, %v467_v18  ;;  %v2258_v21 = vld [vmem:[%s3115_s0 + $0x60] sm:$0xff]  ;;  %v2270_v25 = vand.u32 4294901760, %v466_v22  ;;  %v465_v26 = vld [vmem:[%s3116_s1 + $0x8] sm:$0xff]  ;;  %v2355_v48 = vld [vmem:[%s3115_s0 + $0x78] sm:$0xff] }
   0x7   :  { %132 = vperm.xlu1 %2092, %v2163_v1   ;;  %129 = vperm.xlu0 %2090, %v14_v2   ;;  %v2286_v30 = vand.u32 4294901760, %v465_v26  ;;  %v2293_v31 = vld [vmem:[%s3115_s0 + $0x68] sm:$0xff]  ;;  %v464_v32 = vld [vmem:[%s3116_s1] sm:$0xff] }
   0x8   :  { %v2250_v19 = vsub.f32 %v468_v16, %v2242_v17  ;;  %1880 = vmatprep.subr.mxu0 %v2242_v17  ;;  %v2268_v24 = vsub.f32 %v467_v18, %v2252_v20  ;;  %v2284_v29 = vsub.f32 %v466_v22, %v2270_v25  ;;  %v2308_v37 = vand.u32 4294901760, %v464_v32 }
   0x9   :  { %1881 = vmatpush3.msra.mxu0 %v2242_v17  ;;  %v2305_v36 = vsub.f32 %v465_v26, %v2286_v30 }
   0xa   :  { %v2265_v23 = vand.u32 4294901760, %v2250_v19  ;;  %1882 = vmatprep.subr.mxu0 %v2252_v20  ;;  %v2281_v28 = vand.u32 4294901760, %v2268_v24  ;;  %v2302_v35 = vand.u32 4294901760, %v2284_v29  ;;  %v2318_v41 = vsub.f32 %v464_v32, %v2308_v37 }
   0xb   :  { %2093 = vset.pattern.permute.xlu1 %v2135_v4  ;;  %2096 = vset.pattern.permute.xlu0 %v2136_v5  ;;  %v2315_v40 = vand.u32 4294901760, %v2305_v36 }
   0xc   :  { %241 = vperm.xlu1 %2093, %v14_v2   ;;  %353 = vperm.xlu0 %2096, %v14_v2   ;;  %v781_v27 = vsub.f32 %v2250_v19, %v2265_v23  ;;  %v788_v34 = vsub.f32 %v2268_v24, %v2281_v28  ;;  %v795_v39 = vsub.f32 %v2284_v29, %v2302_v35  ;;  %v2326_v44 = vand.u32 4294901760, %v2318_v41 }
   0xd   :  { %1883 = vmatpush3.msra.mxu0 %v2252_v20  ;;  %v802_v43 = vsub.f32 %v2305_v36, %v2315_v40 }
   0xe   :  { %1884 = vmatprep.subr.mxu0 %v2270_v25  ;;  %v782_v33 = vand.u32 4294901760, %v781_v27  ;;  %v789_v38 = vand.u32 4294901760, %v788_v34  ;;  %v796_v42 = vand.u32 4294901760, %v795_v39  ;;  %v809_v46 = vsub.f32 %v2318_v41, %v2326_v44  ;;  %v28_v34 = vld [vmem:[%s3115_s0 + $0x70] sm:$0xff] }
   0xf   :  { %1885 = vmatpush3.msra.mxu0 %v2270_v25  ;;  %v803_v45 = vand.u32 4294901760, %v802_v43 }
  0x10   :  { %2094 = vset.pattern.permute.xlu1 %v2133_v0  ;;  %356 = vperm.xlu0 %2096, %v2163_v1   ;;  %v810_v47 = vand.u32 4294901760, %v809_v46 }
  0x11   :  { %39 = vperm.xlu1 %2094, %v16_v6   ;;  %1886 = vmatprep.subr.mxu0 %v2286_v30 }
  0x12   :  { %1914 = vmatprep.subr.mxu1 %v782_v33  ;;  %1887 = vmatpush3.msra.mxu0 %v2286_v30 }
  0x13   :  { %1915 = vmatpush3.msra.mxu1 %v782_v33  ;;  %1888 = vmatprep.subr.mxu0 %v2308_v37 }
  0x14   :  { %359 = vperm.xlu0 %2096, %v16_v6   ;;  %1916 = vmatprep.subr.mxu1 %v789_v38 }
  0x15   :  { %2095 = vset.pattern.permute.xlu1 %v2134_v3  ;;  %1917 = vmatpush3.msra.mxu1 %v789_v38 }
  0x16   :  { %135 = vperm.xlu1 %2095, %v16_v6   ;;  %1918 = vmatprep.subr.mxu1 %v796_v42 }
  0x17   :  { %1919 = vmatpush3.msra.mxu1 %v796_v42  ;;  %1889 = vmatpush3.msra.mxu0 %v2308_v37 }
  0x18   :  { %362 = vperm.xlu0 %2096, %v2183_v7   ;;  %1920 = vmatprep.subr.mxu1 %v803_v45 }
  0x19   :  { %1921 = vmatpush3.msra.mxu1 %v803_v45  ;;  %1948 = vmatprep.subr.mxu0 %v2250_v19 }
  0x1a   :  { %2097 = vset.pattern.permute.xlu1 %v2133_v0  ;;  %1922 = vmatprep.subr.mxu1 %v810_v47 }
  0x1b   :  { %42 = vperm.xlu1 %2097, %v2183_v7   ;;  %1923 = vmatpush3.msra.mxu1 %v810_v47 }
  0x1c   :  { %365 = vperm.xlu0 %2096, %v18_v8   ;;  %1982 = vmatprep.subr.mxu1 %v2242_v17 }
  0x1f   :  { %2098 = vset.pattern.permute.xlu1 %v2134_v3 }
  0x20   :  { %138 = vperm.xlu1 %2098, %v2183_v7   ;;  %368 = vperm.xlu0 %2096, %v2194_v9  }
  0x24   :  { %2099 = vset.pattern.permute.xlu1 %v2135_v4  ;;  %371 = vperm.xlu0 %2096, %v2202_v10  }
  0x25   :  { %247 = vperm.xlu1 %2099, %v16_v6  }
  0x28   :  { %374 = vperm.xlu0 %2096, %v2209_v11  }
  0x29   :  { %2100 = vset.pattern.permute.xlu1 %v2133_v0 }
  0x2a   :  { %45 = vperm.xlu1 %2100, %v18_v8  }
  0x2c   :  { %377 = vperm.xlu0 %2096, %v2216_v12  }
  0x2e   :  { %2101 = vset.pattern.permute.xlu1 %v2134_v3 }
  0x2f   :  { %141 = vperm.xlu1 %2101, %v18_v8  }
  0x30   :  { %380 = vperm.xlu0 %2096, %v2222_v13  }
  0x33   :  { %2102 = vset.pattern.permute.xlu1 %v2133_v0 }
  0x34   :  { %48 = vperm.xlu1 %2102, %v2194_v9   ;;  %383 = vperm.xlu0 %2096, %v2229_v14  }
  0x38   :  { %2103 = vset.pattern.permute.xlu1 %v2134_v3  ;;  %386 = vperm.xlu0 %2096, %v2237_v15  }
  0x39   :  { %144 = vperm.xlu1 %2103, %v2194_v9  }
  0x3c   :  { %389 = vperm.xlu0 %2096, %v2258_v21  }
  0x3d   :  { %2104 = vset.pattern.permute.xlu1 %v2135_v4 }
  0x3e   :  { %253 = vperm.xlu1 %2104, %v18_v8  }
  0x40   :  { %392 = vperm.xlu0 %2096, %v2293_v31  }
  0x42   :  { %2105 = vset.pattern.permute.xlu1 %v2133_v0 }
  0x43   :  { %51 = vperm.xlu1 %2105, %v2202_v10  }
  0x44   :  { %2129 = vset.pattern.permute.xlu0 %v2135_v4 }
  0x45   :  { %244 = vperm.xlu0 %2129, %v2163_v1  }
  0x47   :  { %2106 = vset.pattern.permute.xlu1 %v2134_v3 }
  0x48   :  { %147 = vperm.xlu1 %2106, %v2202_v10  }
  0x49   :  { %250 = vperm.xlu0 %2129, %v2183_v7  }
  0x4c   :  { %2107 = vset.pattern.permute.xlu1 %v2133_v0 }
  0x4d   :  { %54 = vperm.xlu1 %2107, %v2209_v11   ;;  %256 = vperm.xlu0 %2129, %v2194_v9  }
  0x51   :  { %2108 = vset.pattern.permute.xlu1 %v2134_v3  ;;  %262 = vperm.xlu0 %2129, %v2209_v11  }
  0x52   :  { %150 = vperm.xlu1 %2108, %v2209_v11  }
  0x55   :  { %268 = vperm.xlu0 %2129, %v2222_v13  }
  0x56   :  { %2109 = vset.pattern.permute.xlu1 %v2135_v4 }
  0x57   :  { %259 = vperm.xlu1 %2109, %v2202_v10  }
  0x59   :  { %274 = vperm.xlu0 %2129, %v2237_v15  }
  0x5b   :  { %2110 = vset.pattern.permute.xlu1 %v2133_v0 }
  0x5c   :  { %57 = vperm.xlu1 %2110, %v2216_v12  }
  0x5d   :  { %280 = vperm.xlu0 %2129, %v2293_v31  }
  0x60   :  { %2111 = vset.pattern.permute.xlu1 %v2134_v3 }
  0x61   :  { %153 = vperm.xlu1 %2111, %v2216_v12   ;;  %286 = vperm.xlu0 %2129, %v2355_v48  }
  0x65   :  { %2112 = vset.pattern.permute.xlu1 %v2133_v0  ;;  %2132 = vset.pattern.permute.xlu0 %v2136_v5 }
  0x66   :  { %60 = vperm.xlu1 %2112, %v2222_v13  }
  0x6a   :  { %2113 = vset.pattern.permute.xlu1 %v2134_v3 }
  0x6b   :  { %156 = vperm.xlu1 %2113, %v2222_v13  }
  0x6f   :  { %2114 = vset.pattern.permute.xlu1 %v2135_v4 }
  0x70   :  { %265 = vperm.xlu1 %2114, %v2216_v12  }
  0x74   :  { %2115 = vset.pattern.permute.xlu1 %v2133_v0 }
  0x75   :  { %63 = vperm.xlu1 %2115, %v2229_v14  }
  0x79   :  { %2116 = vset.pattern.permute.xlu1 %v2134_v3 }
  0x7a   :  { %159 = vperm.xlu1 %2116, %v2229_v14  }
  0x7d   :  { %v2371_v50 = vpop.permute.xlu1 %36  ;;  %v34_v51 = vpop.permute.xlu0 %33 }
  0x7e   :  { %2117 = vset.pattern.permute.xlu1 %v2133_v0  ;;  %vm80_vm0 = vcmp.eq.s32.totalorder %v2373_v52, %v34_v51  ;;  %vm81_vm14 = vcmp.eq.s32.totalorder %v2373_v52, %v2371_v50 }
  0x7f   :  { %66 = vperm.xlu1 %2117, %v2237_v15   ;;  %v1689_v56 = vsel %vm80_vm0, 1.0, %v2137_v55 }
  0x82   :  { %v2378_v53 = vpop.permute.xlu1 %132  ;;  %v130_v54 = vpop.permute.xlu0 %129 }
  0x83   :  { %2118 = vset.pattern.permute.xlu1 %v2134_v3  ;;  %vm176_vm1 = vcmp.eq.s32.totalorder %v2373_v52, %v130_v54  ;;  %vm177_vm13 = vcmp.eq.s32.totalorder %v2373_v52, %v2378_v53 }
  0x84   :  { %162 = vperm.xlu1 %2118, %v2237_v15   ;;  %v1705_v57 = vsel %vm176_vm1, 1.0, %v2137_v55 }
  0x85   :  { %v224_v58 = vadd.f32 %v1705_v57, %v1689_v56 }
  0x87   :  { %v242_v59 = vpop.permute.xlu1 %241  ;;  %v354_v60 = vpop.permute.xlu0 %353 }
  0x88   :  { %vm288_vm2 = vcmp.eq.s32.totalorder %v2373_v52, %v242_v59  ;;  %2119 = vset.pattern.permute.xlu1 %v2135_v4  ;;  %vm400_vm3 = vcmp.eq.s32.totalorder %v2373_v52, %v354_v60 }
  0x89   :  { %v1721_v61 = vsel %vm288_vm2, 1.0, %v2137_v55  ;;  %v1737_v62 = vsel %vm400_vm3, 1.0, %v2137_v55  ;;  %271 = vperm.xlu1 %2119, %v2229_v14  }
  0x8a   :  { %v336_v63 = vadd.f32 %v1721_v61, %v224_v58 }
  0x8b   :  { %v2391_v1 = vpop.permute.xlu0 %356 }
  0x8c   :  { %v448_v2 = vadd.f32 %v1737_v62, %v336_v63  ;;  %v40_v6 = vpop.permute.xlu1 %39  ;;  %vm401_vm0 = vcmp.eq.s32.totalorder %v2373_v52, %v2391_v1 }
  0x8d   :  { %2120 = vset.pattern.permute.xlu1 %v2133_v0  ;;  %vm82_vm6 = vcmp.eq.s32.totalorder %v2373_v52, %v40_v6 }
  0x8e   :  { %v478_v7 = vsel %vm476_vm4, %v448_v2, 0  ;;  %69 = vperm.xlu1 %2120, %v2258_v21   ;;  %v1691_v46 = vsel %vm82_vm6, 1.0, %v2137_v55 }
  0x8f   :  { %v2396_v8 = vand.u32 4294901760, %v478_v7  ;;  %v360_v9 = vpop.permute.xlu0 %359 }
  0x90   :  { %vm402_vm8 = vcmp.eq.s32.totalorder %v2373_v52, %v360_v9  ;;  %v1706_v9 = vsel %vm177_vm13, 1.0, %v2137_v55 }
  0x91   :  { %v136_v10 = vpop.permute.xlu1 %135  ;;  %1924 = vmatprep.mubr.f32.mxu1 %v2396_v8  ;;  %v2400_v11 = vsub.f32 %v478_v7, %v2396_v8  ;;  %v1739_v57 = vsel %vm402_vm8, 1.0, %v2137_v55 }
  0x92   :  { %2121 = vset.pattern.permute.xlu1 %v2134_v3  ;;  %vm178_vm5 = vcmp.eq.s32.totalorder %v2373_v52, %v136_v10  ;;  %v1690_v10 = vsel %vm81_vm14, 1.0, %v2137_v55 }
  0x93   :  { %165 = vperm.xlu1 %2121, %v2258_v21   ;;  %v2404_v12 = vpop.permute.xlu0 %362  ;;  %v597_v13 = vand.u32 4294901760, %v2400_v11  ;;  %v1707_v45 = vsel %vm178_vm5, 1.0, %v2137_v55 }
  0x94   :  { %v226_v49 = vadd.f32 %v1707_v45, %v1691_v46  ;;  %vm403_vm3 = vcmp.eq.s32.totalorder %v2373_v52, %v2404_v12 }
  0x95   :  { %v598_v14 = vsub.f32 %v2400_v11, %v597_v13  ;;  %v1740_v12 = vsel %vm403_vm3, 1.0, %v2137_v55 }
  0x96   :  { %v2410_v15 = vpop.permute.xlu1 %42 }
  0x97   :  { %2122 = vset.pattern.permute.xlu1 %v2133_v0  ;;  %v366_v16 = vpop.permute.xlu0 %365  ;;  %v599_v18 = vand.u32 4294901760, %v598_v14  ;;  %vm83_vm1 = vcmp.eq.s32.totalorder %v2373_v52, %v2410_v15 }
  0x98   :  { %72 = vperm.xlu1 %2122, %v2293_v31   ;;  %vm404_vm11 = vcmp.eq.s32.totalorder %v2373_v52, %v366_v16  ;;  %v225_v16 = vadd.f32 %v1706_v9, %v1690_v10  ;;  %v1692_v15 = vsel %vm83_vm1, 1.0, %v2137_v55 }
  0x99   :  { %1890 = vmatprep.mubr.f32.mxu0 %v599_v18 }
  0x9b   :  { %v2414_v22 = vpop.permute.xlu1 %138  ;;  %v2416_v26 = vpop.permute.xlu0 %368 }
  0x9c   :  { %2123 = vset.pattern.permute.xlu1 %v2134_v3  ;;  %vm179_vm15 = vcmp.eq.s32.totalorder %v2373_v52, %v2414_v22  ;;  %v1738_v22 = vsel %vm401_vm0, 1.0, %v2137_v55  ;;  %vm405_vm8 = vcmp.eq.s32.totalorder %v2373_v52, %v2416_v26 }
  0x9d   :  { %168 = vperm.xlu1 %2123, %v2293_v31   ;;  %v1708_v18 = vsel %vm179_vm15, 1.0, %v2137_v55  ;;  %v1742_v26 = vsel %vm405_vm8, 1.0, %v2137_v55 }
  0x9f   :  { %v2420_v27 = vpop.permute.xlu0 %371 }
  0xa0   :  { %v248_v32 = vpop.permute.xlu1 %247 }
  0xa1   :  { %2124 = vset.pattern.permute.xlu1 %v2135_v4  ;;  %vm290_vm7 = vcmp.eq.s32.totalorder %v2373_v52, %v248_v32 }
  0xa2   :  { %277 = vperm.xlu1 %2124, %v2258_v21   ;;  %v1723_v47 = vsel %vm290_vm7, 1.0, %v2137_v55 }
  0xa3   :  { %v2424_v33 = vpop.permute.xlu0 %374  ;;  %v338_v56 = vadd.f32 %v1723_v47, %v226_v49 }
  0xa5   :  { %v46_v38 = vpop.permute.xlu1 %45  ;;  %v450_v59 = vadd.f32 %v1739_v57, %v338_v56 }
  0xa6   :  { %2125 = vset.pattern.permute.xlu1 %v2133_v0  ;;  %vm84_vm10 = vcmp.eq.s32.totalorder %v2373_v52, %v46_v38  ;;  %v227_v38 = vadd.f32 %v1708_v18, %v1692_v15 }
  0xa7   :  { %75 = vperm.xlu1 %2125, %v28_v34   ;;  %v2430_v39 = vpop.permute.xlu0 %377  ;;  %v1693_v60 = vsel %vm84_vm10, 1.0, %v2137_v55  ;;  %v484_v7 = vsel %vm476_vm4, %v450_v59, 0  ;;  %vm406_vm10 = vcmp.eq.s32.totalorder %v2373_v52, %v2420_v27 }
  0xa8   :  { %v2482_v50 = vand.u32 4294901760, %v484_v7 }
  0xaa   :  { %v142_v31 = vpop.permute.xlu1 %141 }
  0xab   :  { %2126 = vset.pattern.permute.xlu1 %v2134_v3  ;;  %v2433_v42 = vpop.permute.xlu0 %380  ;;  %vm180_vm9 = vcmp.eq.s32.totalorder %v2373_v52, %v142_v31  ;;  %v2494_v31 = vsub.f32 %v484_v7, %v2482_v50 }
  0xac   :  { %171 = vperm.xlu1 %2126, %v28_v34   ;;  %vm409_vm8 = vcmp.eq.s32.totalorder %v2373_v52, %v2433_v42 }
  0xaf   :  { %v2438_v21 = vpop.permute.xlu1 %48  ;;  %v2440_v43 = vpop.permute.xlu0 %383 }
  0xb0   :  { %2127 = vset.pattern.permute.xlu1 %v2133_v0  ;;  %v1709_v0 = vsel %vm180_vm9, 1.0, %v2137_v55  ;;  %vm85_vm6 = vcmp.eq.s32.totalorder %v2373_v52, %v2438_v21 }
  0xb1   :  { %78 = vperm.xlu1 %2127, %v2355_v48   ;;  %v228_v62 = vadd.f32 %v1709_v0, %v1693_v60  ;;  %v1694_v57 = vsel %vm85_vm6, 1.0, %v2137_v55  ;;  %v617_v60 = vand.u32 4294901760, %v2494_v31 }
  0xb3   :  { %v2448_v51 = vpop.permute.xlu0 %386 }
  0xb4   :  { %v145_v54 = vpop.permute.xlu1 %144 }
  0xb5   :  { %2128 = vset.pattern.permute.xlu1 %v2134_v3  ;;  %v1741_v3 = vsel %vm404_vm11, 1.0, %v2137_v55  ;;  %vm181_vm5 = vcmp.eq.s32.totalorder %v2373_v52, %v145_v54  ;;  %vm407_vm11 = vcmp.eq.s32.totalorder %v2373_v52, %v2424_v33 }
  0xb6   :  { %174 = vperm.xlu1 %2128, %v2355_v48   ;;  %v1710_v49 = vsel %vm181_vm5, 1.0, %v2137_v55 }
  0xb7   :  { %v2456_v58 = vpop.permute.xlu0 %389 }
  0xb9   :  { %v254_v61 = vpop.permute.xlu1 %253 }
  0xba   :  { %vm292_vm12 = vcmp.eq.s32.totalorder %v2373_v52, %v254_v61  ;;  %2130 = vset.pattern.permute.xlu1 %v2135_v4  ;;  %v229_v61 = vadd.f32 %v1710_v49, %v1694_v57 }
  0xbb   :  { %v1725_v63 = vsel %vm292_vm12, 1.0, %v2137_v55  ;;  %283 = vperm.xlu1 %2130, %v28_v34   ;;  %v2466_v2 = vpop.permute.xlu0 %392 }
  0xbc   :  { %v340_v6 = vadd.f32 %v1725_v63, %v228_v62 }
  0xbe   :  { %v452_v4 = vadd.f32 %v1741_v3, %v340_v6  ;;  %v2474_v53 = vpop.permute.xlu1 %51 }
  0xbf   :  { %2131 = vset.pattern.permute.xlu1 %v2136_v5  ;;  %vm86_vm14 = vcmp.eq.s32.totalorder %v2373_v52, %v2474_v53 }
  0xc0   :  { %395 = vperm.xlu1 %2131, %v28_v34   ;;  %v245_v14 = vpop.permute.xlu0 %244  ;;  %v490_v1 = vsel %vm476_vm4, %v452_v4, 0 }
  0xc1   :  { %vm289_vm2 = vcmp.eq.s32.totalorder %v2373_v52, %v245_v14  ;;  %v2499_v46 = vand.u32 4294901760, %v490_v1 }
  0xc2   :  { %v1722_v5 = vsel %vm289_vm2, 1.0, %v2137_v55 }
  0xc3   :  { %v337_v32 = vadd.f32 %v1722_v5, %v225_v16  ;;  %v148_v34 = vpop.permute.xlu1 %147  ;;  %v2513_v62 = vsub.f32 %v490_v1, %v2499_v46  ;;  %v618_v16 = vsub.f32 %v2494_v31, %v617_v60 }
  0xc4   :  { %398 = vperm.xlu1 %2131, %v2355_v48   ;;  %v251_v45 = vpop.permute.xlu0 %250  ;;  %vm182_vm12 = vcmp.eq.s32.totalorder %v2373_v52, %v148_v34 }
  0xc5   :  { %v449_v47 = vadd.f32 %v1738_v22, %v337_v32  ;;  %vm291_vm7 = vcmp.eq.s32.totalorder %v2373_v52, %v251_v45  ;;  %v637_v1 = vand.u32 4294901760, %v2513_v62  ;;  %v1711_v5 = vsel %vm182_vm12, 1.0, %v2137_v55 }
  0xc6   :  { %v1724_v54 = vsel %vm291_vm7, 1.0, %v2137_v55  ;;  %v619_v57 = vand.u32 4294901760, %v618_v16 }
  0xc7   :  { %v481_v48 = vsel %vm476_vm4, %v449_v47, 0  ;;  %v339_v56 = vadd.f32 %v1724_v54, %v227_v38 }
  0xc8   :  { %v2509_v21 = vand.u32 4294901760, %v481_v48  ;;  %v55_v0 = vpop.permute.xlu1 %54  ;;  %v257_v59 = vpop.permute.xlu0 %256 }
  0xc9   :  { %v451_v3 = vadd.f32 %v1740_v12, %v339_v56  ;;  %vm293_vm9 = vcmp.eq.s32.totalorder %v2373_v52, %v257_v59  ;;  %vm87_vm13 = vcmp.eq.s32.totalorder %v2373_v52, %v55_v0  ;;  %v1744_v56 = vsel %vm407_vm11, 1.0, %v2137_v55 }
  0xca   :  { %v2520_v63 = vsub.f32 %v481_v48, %v2509_v21  ;;  %v1726_v6 = vsel %vm293_vm9, 1.0, %v2137_v55  ;;  %1925 = vmatmul.mubr.f32.vlgmr.msra.gmra.mxu1 %v2509_v21  ;;  %v1696_v38 = vsel %vm87_vm13, 1.0, %v2137_v55  ;;  %v638_v0 = vsub.f32 %v2513_v62, %v637_v1 }
  0xcb   :  { %v487_v7 = vsel %vm476_vm4, %v451_v3, 0  ;;  %v341_v9 = vadd.f32 %v1726_v6, %v229_v61  ;;  %1927 = vmatprep.mubr.f32.mxu1 %v2482_v50  ;;  %1983 = vmatpush3.msra.mxu1 %v2242_v17  ;;  %v1695_v59 = vsel %vm86_vm14, 1.0, %v2137_v55  ;;  %v1743_v6 = vsel %vm406_vm10, 1.0, %v2137_v55 }
  0xcc   :  { %v2530_v4 = vand.u32 4294901760, %v487_v7  ;;  %v263_v10 = vpop.permute.xlu0 %262  ;;  %v607_v14 = vand.u32 4294901760, %v2520_v63  ;;  %1984 = vmatprep.subr.mxu1 %v2252_v20  ;;  %vm408_vm9 = vcmp.eq.s32.totalorder %v2373_v52, %v2430_v39 }
  0xcd   :  { %v453_v18 = vadd.f32 %v1742_v26, %v341_v9  ;;  %v151_v22 = vpop.permute.xlu1 %150  ;;  %vm295_vm15 = vcmp.eq.s32.totalorder %v2373_v52, %v263_v10  ;;  %1985 = vmatpush3.msra.mxu1 %v2252_v20  ;;  %v1745_v42 = vsel %vm408_vm9, 1.0, %v2137_v55  ;;  %vm413_vm9 = vcmp.eq.s32.totalorder %v2373_v52, %v2466_v2 }
  0xce   :  { %v2547_v15 = vsub.f32 %v487_v7, %v2530_v4  ;;  %vm183_vm0 = vcmp.eq.s32.totalorder %v2373_v52, %v151_v22  ;;  %1928 = vmatmul.mubr.f32.gmra.mxu1 %v2530_v4  ;;  %v608_v32 = vsub.f32 %v2520_v63, %v607_v14  ;;  %1986 = vmatprep.subr.mxu1 %v2270_v25  ;;  %v1728_v47 = vsel %vm295_vm15, 1.0, %v2137_v55 }
  0xcf   :  { %v493_v34 = vsel %vm476_vm4, %v453_v18, 0  ;;  %v1712_v45 = vsel %vm183_vm0, 1.0, %v2137_v55  ;;  %1930 = vmatprep.mubr.f32.mxu1 %v2499_v46  ;;  %1987 = vmatpush3.msra.mxu1 %v2270_v25  ;;  %v230_v7 = vadd.f32 %v1711_v5, %v1695_v59  ;;  %v639_v22 = vand.u32 4294901760, %v638_v0 }
  0xd0   :  { %v2563_v12 = vand.u32 4294901760, %v493_v34  ;;  %v231_v49 = vadd.f32 %v1712_v45, %v1696_v38  ;;  %v609_v54 = vand.u32 4294901760, %v608_v32  ;;  %v627_v48 = vand.u32 4294901760, %v2547_v15  ;;  %1988 = vmatprep.subr.mxu1 %v2286_v30  ;;  %v269_v59 = vpop.permute.xlu0 %268 }
  0xd1   :  { %1989 = vmatpush3.msra.mxu1 %v2286_v30  ;;  %vm297_vm3 = vcmp.eq.s32.totalorder %v2373_v52, %v269_v59  ;;  %vm411_vm0 = vcmp.eq.s32.totalorder %v2373_v52, %v2448_v51 }
  0xd2   :  { %v2580_v61 = vsub.f32 %v493_v34, %v2563_v12  ;;  %v343_v3 = vadd.f32 %v1728_v47, %v231_v49  ;;  %v260_v26 = vpop.permute.xlu1 %259  ;;  %1891 = vmatmul.mubr.f32.vlgmr.msra.gmra.mxu0 %v609_v54  ;;  %1931 = vmatmul.mubr.f32.gmra.mxu1 %v2563_v12  ;;  %v628_v33 = vsub.f32 %v2547_v15, %v627_v48 }
  0xd3   :  { %vm294_vm1 = vcmp.eq.s32.totalorder %v2373_v52, %v260_v26  ;;  %1893 = vmatprep.mubr.f32.mxu0 %v619_v57  ;;  %1949 = vmatpush3.msra.mxu0 %v2250_v19 }
  0xd4   :  { %v455_v53 = vadd.f32 %v1744_v56, %v343_v3  ;;  %v1727_v9 = vsel %vm294_vm1, 1.0, %v2137_v55  ;;  %v629_v10 = vand.u32 4294901760, %v628_v33  ;;  %v647_v16 = vand.u32 4294901760, %v2580_v61  ;;  %1950 = vmatprep.subr.mxu0 %v2268_v24  ;;  %1990 = vmatprep.subr.mxu1 %v2308_v37 }
  0xd5   :  { %v342_v18 = vadd.f32 %v1727_v9, %v230_v7  ;;  %1951 = vmatpush3.msra.mxu0 %v2268_v24  ;;  %1991 = vmatpush3.msra.mxu1 %v2308_v37  ;;  %v1730_v7 = vsel %vm297_vm3, 1.0, %v2137_v55  ;;  %vm410_vm1 = vcmp.eq.s32.totalorder %v2373_v52, %v2440_v43 }
  0xd6   :  { %v499_v27 = vsel %vm476_vm4, %v455_v53, 0  ;;  %1894 = vmatmul.mubr.f32.gmra.mxu0 %v629_v10  ;;  %v648_v19 = vsub.f32 %v2580_v61, %v647_v16  ;;  %1952 = vmatprep.subr.mxu0 %v2284_v29  ;;  %v1747_v51 = vsel %vm410_vm1, 1.0, %v2137_v55 }
  0xd7   :  { %v2603_v5 = vand.u32 4294901760, %v499_v27  ;;  %v454_v32 = vadd.f32 %v1743_v6, %v342_v18  ;;  %v58_v38 = vpop.permute.xlu1 %57  ;;  %1896 = vmatprep.mubr.f32.mxu0 %v639_v22  ;;  %1953 = vmatpush3.msra.mxu0 %v2284_v29 }
  0xd8   :  { %v649_v34 = vand.u32 4294901760, %v648_v19  ;;  %1954 = vmatprep.subr.mxu0 %v2305_v36  ;;  %2050 = vmatprep.subr.mxu1 %v2242_v17  ;;  %vm88_vm7 = vcmp.eq.s32.totalorder %v2373_v52, %v58_v38 }
  0xd9   :  { %v2609_v24 = vsub.f32 %v499_v27, %v2603_v5  ;;  %v496_v45 = vsel %vm476_vm4, %v454_v32, 0  ;;  %1955 = vmatpush3.msra.mxu0 %v2305_v36  ;;  %v1697_v10 = vsel %vm88_vm7, 1.0, %v2137_v55  ;;  %v1746_v27 = vsel %vm409_vm8, 1.0, %v2137_v55 }
  0xda   :  { %v2613_v47 = vand.u32 4294901760, %v496_v45  ;;  %1897 = vmatmul.mubr.f32.gmra.mxu0 %v649_v34  ;;  %1956 = vmatprep.subr.mxu0 %v2318_v41 }
  0xdb   :  { %v667_v49 = vand.u32 4294901760, %v2609_v24  ;;  %1957 = vmatpush3.msra.mxu0 %v2318_v41 }
  0xdc   :  { %v2619_v29 = vsub.f32 %v496_v45, %v2613_v47  ;;  %v154_v54 = vpop.permute.xlu1 %153  ;;  %1933 = vmatprep.mubr.f32.mxu1 %v2613_v47  ;;  %2016 = vmatprep.subr.mxu0 %v2265_v23 }
  0xdd   :  { %1934 = vmatmul.mubr.f32.gmra.mxu1 %v2603_v5  ;;  %v668_v56 = vsub.f32 %v2609_v24, %v667_v49  ;;  %vm184_vm5 = vcmp.eq.s32.totalorder %v2373_v52, %v154_v54 }
  0xde   :  { %v657_v36 = vand.u32 4294901760, %v2619_v29  ;;  %v1713_v53 = vsel %vm184_vm5, 1.0, %v2137_v55 }
  0xdf   :  { %v669_v3 = vand.u32 4294901760, %v668_v56  ;;  %v232_v19 = vadd.f32 %v1713_v53, %v1697_v10  ;;  %v275_v10 = vpop.permute.xlu0 %274 }
  0xe0   :  { %v658_v41 = vsub.f32 %v2619_v29, %v657_v36  ;;  %vm299_vm12 = vcmp.eq.s32.totalorder %v2373_v52, %v275_v10 }
  0xe1   :  { %v61_v57 = vpop.permute.xlu1 %60 }
  0xe2   :  { %v659_v0 = vand.u32 4294901760, %v658_v41  ;;  %vm89_vm2 = vcmp.eq.s32.totalorder %v2373_v52, %v61_v57 }
  0xe3   :  { %v1698_v33 = vsel %vm89_vm2, 1.0, %v2137_v55 }
  0xe4   :  { %1899 = vmatprep.mubr.f32.mxu0 %v659_v0 }
  0xe5   :  { %1900 = vmatmul.mubr.f32.gmra.mxu0 %v669_v3 }
  0xe6   :  { %v157_v26 = vpop.permute.xlu1 %156 }
  0xe7   :  { %vm185_vm6 = vcmp.eq.s32.totalorder %v2373_v52, %v157_v26 }
  0xe8   :  { %v1714_v6 = vsel %vm185_vm6, 1.0, %v2137_v55 }
  0xe9   :  { %v233_v9 = vadd.f32 %v1714_v6, %v1698_v33 }
  0xeb   :  { %v345_v18 = vadd.f32 %v1730_v7, %v233_v9  ;;  %v266_v22 = vpop.permute.xlu1 %265 }
  0xec   :  { %vm296_vm10 = vcmp.eq.s32.totalorder %v2373_v52, %v266_v22 }
  0xed   :  { %v457_v32 = vadd.f32 %v1746_v27, %v345_v18  ;;  %v1729_v38 = vsel %vm296_vm10, 1.0, %v2137_v55  ;;  %vm412_vm10 = vcmp.eq.s32.totalorder %v2373_v52, %v2456_v58 }
  0xee   :  { %v344_v34 = vadd.f32 %v1729_v38, %v232_v19  ;;  %v1749_v2 = vsel %vm412_vm10, 1.0, %v2137_v55 }
  0xef   :  { %v505_v45 = vsel %vm476_vm4, %v457_v32, 0  ;;  %v1732_v32 = vsel %vm299_vm12, 1.0, %v2137_v55 }
  0xf0   :  { %v2650_v54 = vand.u32 4294901760, %v505_v45  ;;  %v456_v56 = vadd.f32 %v1745_v42, %v344_v34  ;;  %v64_v41 = vpop.permute.xlu1 %63 }
  0xf1   :  { %vm90_vm15 = vcmp.eq.s32.totalorder %v2373_v52, %v64_v41  ;;  %v1748_v41 = vsel %vm411_vm0, 1.0, %v2137_v55 }
  0xf2   :  { %v2653_v57 = vsub.f32 %v505_v45, %v2650_v54  ;;  %v502_v39 = vsel %vm476_vm4, %v456_v56, 0  ;;  %v1699_v42 = vsel %vm90_vm15, 1.0, %v2137_v55 }
  0xf3   :  { %v2656_v0 = vand.u32 4294901760, %v502_v39 }
  0xf4   :  { %v3123_v59 = vand.u32 4294901760, %v2653_v57 }
  0xf5   :  { %v2660_v3 = vsub.f32 %v502_v39, %v2656_v0  ;;  %v160_v26 = vpop.permute.xlu1 %159  ;;  %1936 = vmatprep.mubr.f32.mxu1 %v2656_v0 }
  0xf6   :  { %1937 = vmatmul.mubr.f32.gmra.mxu1 %v2650_v54  ;;  %v688_v6 = vsub.f32 %v2653_v57, %v3123_v59  ;;  %vm186_vm13 = vcmp.eq.s32.totalorder %v2373_v52, %v160_v26 }
  0xf7   :  { %v3124_v33 = vand.u32 4294901760, %v2660_v3  ;;  %v1715_v38 = vsel %vm186_vm13, 1.0, %v2137_v55 }
  0xf8   :  { %v689_v18 = vand.u32 4294901760, %v688_v6  ;;  %v234_v39 = vadd.f32 %v1715_v38, %v1699_v42 }
  0xf9   :  { %v678_v7 = vsub.f32 %v2660_v3, %v3124_v33 }
  0xfa   :  { %v67_v53 = vpop.permute.xlu1 %66 }
  0xfb   :  { %v679_v9 = vand.u32 4294901760, %v678_v7  ;;  %vm91_vm11 = vcmp.eq.s32.totalorder %v2373_v52, %v67_v53 }
  0xfc   :  { %v1700_v27 = vsel %vm91_vm11, 1.0, %v2137_v55 }
  0xfd   :  { %1902 = vmatprep.mubr.f32.mxu0 %v679_v9 }
  0xfe   :  { %1903 = vmatmul.mubr.f32.gmra.mxu0 %v689_v18 }
  0xff   :  { %v163_v22 = vpop.permute.xlu1 %162 }
 0x100   :  { %vm187_vm14 = vcmp.eq.s32.totalorder %v2373_v52, %v163_v22 }
 0x101   :  { %v1716_v19 = vsel %vm187_vm14, 1.0, %v2137_v55 }
 0x102   :  { %v235_v34 = vadd.f32 %v1716_v19, %v1700_v27 }
 0x104   :  { %v347_v45 = vadd.f32 %v1732_v32, %v235_v34  ;;  %v272_v56 = vpop.permute.xlu1 %271 }
 0x105   :  { %vm298_vm2 = vcmp.eq.s32.totalorder %v2373_v52, %v272_v56 }
 0x106   :  { %v459_v26 = vadd.f32 %v1748_v41, %v347_v45  ;;  %v1731_v6 = vsel %vm298_vm2, 1.0, %v2137_v55 }
 0x107   :  { %v346_v7 = vadd.f32 %v1731_v6, %v234_v39  ;;  %v281_v39 = vpop.permute.xlu0 %280 }
 0x108   :  { %v511_v53 = vsel %vm476_vm4, %v459_v26, 0  ;;  %vm301_vm5 = vcmp.eq.s32.totalorder %v2373_v52, %v281_v39 }
 0x109   :  { %v2690_v9 = vand.u32 4294901760, %v511_v53  ;;  %v458_v10 = vadd.f32 %v1747_v51, %v346_v7  ;;  %v70_v18 = vpop.permute.xlu1 %69 }
 0x10a   :  { %vm92_vm8 = vcmp.eq.s32.totalorder %v2373_v52, %v70_v18  ;;  %v1750_v18 = vsel %vm413_vm9, 1.0, %v2137_v55 }
 0x10b   :  { %v2693_v22 = vsub.f32 %v511_v53, %v2690_v9  ;;  %v508_v43 = vsel %vm476_vm4, %v458_v10, 0  ;;  %v1734_v53 = vsel %vm301_vm5, 1.0, %v2137_v55 }
 0x10c   :  { %v2696_v27 = vand.u32 4294901760, %v508_v43 }
 0x10d   :  { %v3121_v19 = vand.u32 4294901760, %v2693_v22 }
 0x10e   :  { %v2700_v32 = vsub.f32 %v508_v43, %v2696_v27  ;;  %v166_v38 = vpop.permute.xlu1 %165  ;;  %1939 = vmatprep.mubr.f32.mxu1 %v2696_v27 }
 0x10f   :  { %1940 = vmatmul.mubr.f32.gmra.mxu1 %v2690_v9  ;;  %v708_v42 = vsub.f32 %v2693_v22, %v3121_v19  ;;  %vm188_vm6 = vcmp.eq.s32.totalorder %v2373_v52, %v166_v38 }
 0x110   :  { %v3122_v34 = vand.u32 4294901760, %v2700_v32  ;;  %v1717_v10 = vsel %vm188_vm6, 1.0, %v2137_v55 }
 0x111   :  { %v709_v26 = vand.u32 4294901760, %v708_v42  ;;  %v1701_v42 = vsel %vm92_vm8, 1.0, %v2137_v55 }
 0x112   :  { %v698_v45 = vsub.f32 %v2700_v32, %v3122_v34 }
 0x113   :  { %v73_v56 = vpop.permute.xlu1 %72 }
 0x114   :  { %v699_v41 = vand.u32 4294901760, %v698_v45  ;;  %vm93_vm3 = vcmp.eq.s32.totalorder %v2373_v52, %v73_v56  ;;  %v236_v56 = vadd.f32 %v1717_v10, %v1701_v42 }
 0x115   :  { %v1702_v7 = vsel %vm93_vm3, 1.0, %v2137_v55 }
 0x116   :  { %1905 = vmatprep.mubr.f32.mxu0 %v699_v41 }
 0x117   :  { %1906 = vmatmul.mubr.f32.gmra.mxu0 %v709_v26 }
 0x118   :  { %v169_v6 = vpop.permute.xlu1 %168 }
 0x119   :  { %vm189_vm7 = vcmp.eq.s32.totalorder %v2373_v52, %v169_v6 }
 0x11a   :  { %v1718_v51 = vsel %vm189_vm7, 1.0, %v2137_v55 }
 0x11b   :  { %v237_v43 = vadd.f32 %v1718_v51, %v1702_v7 }
 0x11d   :  { %v349_v38 = vadd.f32 %v1734_v53, %v237_v43  ;;  %v278_v45 = vpop.permute.xlu1 %277 }
 0x11e   :  { %vm300_vm11 = vcmp.eq.s32.totalorder %v2373_v52, %v278_v45 }
 0x11f   :  { %v461_v41 = vadd.f32 %v1750_v18, %v349_v38  ;;  %v1733_v39 = vsel %vm300_vm11, 1.0, %v2137_v55 }
 0x120   :  { %v348_v26 = vadd.f32 %v1733_v39, %v236_v56 }
 0x121   :  { %v517_v6 = vsel %vm476_vm4, %v461_v41, 0 }
 0x122   :  { %v2730_v7 = vand.u32 4294901760, %v517_v6  ;;  %v460_v51 = vadd.f32 %v1749_v2, %v348_v26  ;;  %v76_v53 = vpop.permute.xlu1 %75 }
 0x123   :  { %vm94_vm13 = vcmp.eq.s32.totalorder %v2373_v52, %v76_v53 }
 0x124   :  { %v2733_v43 = vsub.f32 %v517_v6, %v2730_v7  ;;  %v514_v58 = vsel %vm476_vm4, %v460_v51, 0 }
 0x125   :  { %v2736_v10 = vand.u32 4294901760, %v514_v58 }
 0x126   :  { %v3119_v42 = vand.u32 4294901760, %v2733_v43 }
 0x127   :  { %v2740_v38 = vsub.f32 %v514_v58, %v2736_v10  ;;  %v172_v45 = vpop.permute.xlu1 %171  ;;  %1942 = vmatprep.mubr.f32.mxu1 %v2736_v10 }
 0x128   :  { %1943 = vmatmul.mubr.f32.gmra.mxu1 %v2730_v7  ;;  %v728_v56 = vsub.f32 %v2733_v43, %v3119_v42  ;;  %vm190_vm12 = vcmp.eq.s32.totalorder %v2373_v52, %v172_v45  ;;  %v287_v42 = vpop.permute.xlu0 %286 }
 0x129   :  { %v3120_v18 = vand.u32 4294901760, %v2740_v38  ;;  %v1719_v58 = vsel %vm190_vm12, 1.0, %v2137_v55  ;;  %vm303_vm1 = vcmp.eq.s32.totalorder %v2373_v52, %v287_v42 }
 0x12a   :  { %v729_v2 = vand.u32 4294901760, %v728_v56  ;;  %v1736_v19 = vsel %vm303_vm1, 1.0, %v2137_v55 }
 0x12b   :  { %v718_v41 = vsub.f32 %v2740_v38, %v3120_v18 }
 0x12c   :  { %v79_v39 = vpop.permute.xlu1 %78 }
 0x12d   :  { %v719_v26 = vand.u32 4294901760, %v718_v41  ;;  %vm95_vm0 = vcmp.eq.s32.totalorder %v2373_v52, %v79_v39  ;;  %v1703_v41 = vsel %vm94_vm13, 1.0, %v2137_v55 }
 0x12e   :  { %v1704_v45 = vsel %vm95_vm0, 1.0, %v2137_v55 }
 0x12f   :  { %1908 = vmatprep.mubr.f32.mxu0 %v719_v26 }
 0x130   :  { %1909 = vmatmul.mubr.f32.gmra.mxu0 %v729_v2  ;;  %v238_v2 = vadd.f32 %v1719_v58, %v1703_v41 }
 0x131   :  { %v175_v6 = vpop.permute.xlu1 %174 }
 0x132   :  { %vm191_vm14 = vcmp.eq.s32.totalorder %v2373_v52, %v175_v6 }
 0x133   :  { %v1720_v56 = vsel %vm191_vm14, 1.0, %v2137_v55 }
 0x134   :  { %v239_v6 = vadd.f32 %v1720_v56, %v1704_v45 }
 0x136   :  { %v284_v51 = vpop.permute.xlu1 %283  ;;  %v351_v33 = vadd.f32 %v1736_v19, %v239_v6 }
 0x137   :  { %vm302_vm15 = vcmp.eq.s32.totalorder %v2373_v52, %v284_v51 }
 0x138   :  { %v1735_v26 = vsel %vm302_vm15, 1.0, %v2137_v55 }
 0x139   :  { %v350_v18 = vadd.f32 %v1735_v26, %v238_v2 }
 0x13b   :  { %v396_v53 = vpop.permute.xlu1 %395 }
 0x13c   :  { %vm414_vm2 = vcmp.eq.s32.totalorder %v2373_v52, %v396_v53 }
 0x13d   :  { %v1751_v51 = vsel %vm414_vm2, 1.0, %v2137_v55 }
 0x13e   :  { %v462_v39 = vadd.f32 %v1751_v51, %v350_v18 }
 0x13f   :  { %v399_v34 = vpop.permute.xlu1 %398 }
 0x140   :  { %v520_v59 = vsel %vm476_vm4, %v462_v39, 0  ;;  %vm415_vm3 = vcmp.eq.s32.totalorder %v2373_v52, %v399_v34 }
 0x141   :  { %v2767_v58 = vand.u32 4294901760, %v520_v59  ;;  %v1752_v41 = vsel %vm415_vm3, 1.0, %v2137_v55 }
 0x142   :  { %v463_v42 = vadd.f32 %v1752_v41, %v351_v33 }
 0x143   :  { %v2771_v56 = vsub.f32 %v520_v59, %v2767_v58  ;;  %1945 = vmatprep.mubr.f32.mxu1 %v2767_v58 }
 0x144   :  { %v523_v18 = vsel %vm476_vm4, %v463_v42, 0  ;;  %vm1668_vm4 = vcmask 261120  }
 0x145   :  { %v2775_v26 = vand.u32 4294901760, %v523_v18  ;;  %v737_v2 = vand.u32 4294901760, %v2771_v56 }
 0x147   :  { %v746_v19 = vsub.f32 %v523_v18, %v2775_v26  ;;  %1946 = vmatmul.mubr.f32.gmra.mxu1 %v2775_v26  ;;  %v738_v52 = vsub.f32 %v2771_v56, %v737_v2 }
 0x148   :  { %1992 = vmatprep.mubr.f32.mxu1 %v597_v13 }
 0x149   :  { %v739_v55 = vand.u32 4294901760, %v738_v52  ;;  %v747_v59 = vand.u32 4294901760, %v746_v19 }
 0x14b   :  { %1911 = vmatprep.mubr.f32.mxu0 %v739_v55  ;;  %1993 = vmatmul.mubr.f32.vlgmr.msra.gmra.mxu1 %v607_v14  ;;  %v748_v33 = vsub.f32 %v746_v19, %v747_v59  ;;  %v2961_v55 = vld [vmem:[%s3117_s2] ss:$0 sm:$0xff] }
 0x14c   :  { %1995 = vmatprep.mubr.f32.mxu1 %v617_v60  ;;  %2051 = vmatpush3.msra.mxu1 %v2242_v17  ;;  %v3125_v17 = vand.u32 4294901760, %v2660_v3 }
 0x14d   :  { %v749_v34 = vand.u32 4294901760, %v748_v33  ;;  %2052 = vmatprep.subr.mxu1 %v2252_v20 }
 0x14e   :  { %2053 = vmatpush3.msra.mxu1 %v2252_v20  ;;  %v3126_v20 = vand.u32 4294901760, %v2653_v57 }
 0x14f   :  { %1912 = vmatmul.mubr.f32.gmra.mxu0 %v749_v34  ;;  %1996 = vmatmul.mubr.f32.gmra.mxu1 %v627_v48 }
 0x150   :  { %1958 = vmatprep.mubr.f32.mxu0 %v2400_v11  ;;  %1998 = vmatprep.mubr.f32.mxu1 %v637_v1 }
 0x151   :  { %2054 = vmatprep.subr.mxu1 %v2270_v25 }
 0x152   :  { %2055 = vmatpush3.msra.mxu1 %v2270_v25  ;;  %v3128_v25 = vand.u32 4294901760, %v2693_v22 }
 0x153   :  { %1959 = vmatmul.mubr.f32.vlgmr.msra.gmra.mxu0 %v2520_v63  ;;  %1999 = vmatmul.mubr.f32.gmra.mxu1 %v647_v16 }
 0x154   :  { %2017 = vmatpush3.msra.mxu0 %v2265_v23  ;;  %1961 = vmatprep.mubr.f32.mxu0 %v2494_v31  ;;  %v3127_v23 = vand.u32 4294901760, %v2700_v32 }
 0x155   :  { %2001 = vmatprep.mubr.f32.mxu1 %v657_v36  ;;  %2018 = vmatprep.subr.mxu0 %v2281_v28 }
 0x156   :  { %2019 = vmatpush3.msra.mxu0 %v2281_v28  ;;  %2056 = vmatprep.subr.mxu1 %v2286_v30  ;;  %v3129_v28 = vand.u32 4294901760, %v2740_v38 }
 0x157   :  { %1962 = vmatmul.mubr.f32.gmra.mxu0 %v2547_v15  ;;  %2002 = vmatmul.mubr.f32.gmra.mxu1 %v667_v49 }
 0x158   :  { %1964 = vmatprep.mubr.f32.mxu0 %v2513_v62  ;;  %2004 = vmatprep.mubr.f32.mxu1 %v3125_v17 }
 0x159   :  { %2020 = vmatprep.subr.mxu0 %v2302_v35  ;;  %2057 = vmatpush3.msra.mxu1 %v2286_v30  ;;  %v3130_v30 = vand.u32 4294901760, %v2733_v43 }
 0x15a   :  { %2021 = vmatpush3.msra.mxu0 %v2302_v35  ;;  %2058 = vmatprep.subr.mxu1 %v2308_v37 }
 0x15b   :  { %1965 = vmatmul.mubr.f32.gmra.mxu0 %v2580_v61  ;;  %2005 = vmatmul.mubr.f32.gmra.mxu1 %v3126_v20 }
 0x15c   :  { %1967 = vmatprep.mubr.f32.mxu0 %v2619_v29  ;;  %2007 = vmatprep.mubr.f32.mxu1 %v3127_v23 }
 0x15d   :  { %2022 = vmatprep.subr.mxu0 %v2315_v40  ;;  %2059 = vmatpush3.msra.mxu1 %v2308_v37 }
 0x15e   :  { %2023 = vmatpush3.msra.mxu0 %v2315_v40 }
 0x15f   :  { %1968 = vmatmul.mubr.f32.gmra.mxu0 %v2609_v24  ;;  %2008 = vmatmul.mubr.f32.gmra.mxu1 %v3128_v25 }
 0x160   :  { %1970 = vmatprep.mubr.f32.mxu0 %v2660_v3  ;;  %2010 = vmatprep.mubr.f32.mxu1 %v3129_v28 }
 0x161   :  { %2024 = vmatprep.subr.mxu0 %v2326_v44 }
 0x162   :  { %2025 = vmatpush3.msra.mxu0 %v2326_v44 }
 0x163   :  { %1971 = vmatmul.mubr.f32.gmra.mxu0 %v2653_v57  ;;  %2011 = vmatmul.mubr.f32.gmra.mxu1 %v3130_v30 }
 0x164   :  { %1973 = vmatprep.mubr.f32.mxu0 %v2700_v32  ;;  %2013 = vmatprep.mubr.f32.mxu1 %v737_v2 }
 0x167   :  { %1974 = vmatmul.mubr.f32.gmra.mxu0 %v2693_v22  ;;  %2014 = vmatmul.mubr.f32.gmra.mxu1 %v747_v59 }
 0x168   :  { %1976 = vmatprep.mubr.f32.mxu0 %v2740_v38  ;;  %2060 = vmatprep.mubr.f32.mxu1 %v2396_v8 }
 0x16b   :  { %1977 = vmatmul.mubr.f32.gmra.mxu0 %v2733_v43  ;;  %2061 = vmatmul.mubr.f32.vlgmr.msra.gmra.mxu1 %v2509_v21 }
 0x16c   :  { %1979 = vmatprep.mubr.f32.mxu0 %v2771_v56  ;;  %2063 = vmatprep.mubr.f32.mxu1 %v2482_v50 }
 0x16f   :  { %1980 = vmatmul.mubr.f32.gmra.mxu0 %v746_v19  ;;  %2064 = vmatmul.mubr.f32.gmra.mxu1 %v2530_v4 }
 0x170   :  { %2026 = vmatprep.mubr.f32.mxu0 %v2396_v8  ;;  %2066 = vmatprep.mubr.f32.mxu1 %v2499_v46 }
 0x173   :  { %2027 = vmatmul.mubr.f32.vlgmr.msra.gmra.mxu0 %v2509_v21  ;;  %2067 = vmatmul.mubr.f32.gmra.mxu1 %v2563_v12 }
 0x174   :  { %2029 = vmatprep.mubr.f32.mxu0 %v2482_v50  ;;  %2069 = vmatprep.mubr.f32.mxu1 %v2613_v47 }
 0x177   :  { %2030 = vmatmul.mubr.f32.gmra.mxu0 %v2530_v4  ;;  %2070 = vmatmul.mubr.f32.gmra.mxu1 %v2603_v5 }
 0x178   :  { %2032 = vmatprep.mubr.f32.mxu0 %v2499_v46  ;;  %2072 = vmatprep.mubr.f32.mxu1 %v2656_v0 }
 0x17b   :  { %2033 = vmatmul.mubr.f32.gmra.mxu0 %v2563_v12  ;;  %2073 = vmatmul.mubr.f32.gmra.mxu1 %v2650_v54 }
 0x17c   :  { %2035 = vmatprep.mubr.f32.mxu0 %v2613_v47  ;;  %2075 = vmatprep.mubr.f32.mxu1 %v2696_v27 }
 0x17f   :  { %2036 = vmatmul.mubr.f32.gmra.mxu0 %v2603_v5  ;;  %2076 = vmatmul.mubr.f32.gmra.mxu1 %v2690_v9 }
 0x180   :  { %2038 = vmatprep.mubr.f32.mxu0 %v2656_v0  ;;  %2078 = vmatprep.mubr.f32.mxu1 %v2736_v10 }
 0x183   :  { %2039 = vmatmul.mubr.f32.gmra.mxu0 %v2650_v54  ;;  %2079 = vmatmul.mubr.f32.gmra.mxu1 %v2730_v7 }
 0x184   :  { %2041 = vmatprep.mubr.f32.mxu0 %v2696_v27  ;;  %2081 = vmatprep.mubr.f32.mxu1 %v2767_v58 }
 0x187   :  { %2042 = vmatmul.mubr.f32.gmra.mxu0 %v2690_v9  ;;  %2082 = vmatmul.mubr.f32.gmra.mxu1 %v2775_v26 }
 0x188   :  { %2044 = vmatprep.mubr.f32.mxu0 %v2736_v10 }
 0x18a   :  { %v2874_v35 = vpop.f32.mrf.mxu1 }
 0x18b   :  { %2045 = vmatmul.mubr.f32.gmra.mxu0 %v2730_v7 }
 0x18c   :  { %2047 = vmatprep.mubr.f32.mxu0 %v2767_v58  ;;  %v2876_v37 = vpop.f32.mrf.mxu1 }
 0x18e   :  { %v2878_v40 = vpop.f32.mrf.mxu1 }
 0x18f   :  { %2048 = vmatmul.mubr.f32.gmra.mxu0 %v2775_v26 }
 0x190   :  { %v2880_v8 = vpop.f32.mrf.mxu1 }
 0x192   :  { %v1892_v44 = vpop.f32.mrf.mxu0  ;;  %v2882_v13 = vpop.f32.mrf.mxu1 }
 0x193   :  { %v612_v20 = vadd.f32 %v1892_v44, %v2961_v55 }
 0x194   :  { %v601_v11 = vpop.f32.mrf.mxu0  ;;  %v2884_v31 = vpop.f32.mrf.mxu1 }
 0x195   :  { %v602_v28 = vadd.f32 %v2961_v55, %v601_v11 }
 0x196   :  { %v1895_v50 = vpop.f32.mrf.mxu0 }
 0x197   :  { %v848_v44 = vadd.f32 %v2876_v37, %v602_v28 }
 0x198   :  { %v621_v46 = vpop.f32.mrf.mxu0 }
 0x19a   :  { %v2888_v60 = vpop.f32.mrf.mxu0 }
 0x19b   :  { %v652_v11 = vadd.f32 %v2888_v60, %v2961_v55 }
 0x19c   :  { %v2892_v63 = vpop.f32.mrf.mxu0 }
 0x19d   :  { %v2886_v21 = vpop.f32.mrf.mxu1  ;;  %v878_v60 = vadd.f32 %v2882_v13, %v652_v11 }
 0x19f   :  { %v2890_v62 = vpop.f32.mrf.mxu1 }
 0x1a5   :  { %v2896_v14 = vpop.f32.mrf.mxu0 }
 0x1a6   :  { %v672_v37 = vadd.f32 %v2896_v14, %v2961_v55 }
 0x1a7   :  { %v2900_v15 = vpop.f32.mrf.mxu0 }
 0x1a8   :  { %v890_v13 = vadd.f32 %v2886_v21, %v672_v37 }
 0x1b6   :  { %v2894_v4 = vpop.f32.mrf.mxu1 }
 0x1b8   :  { %v2898_v1 = vpop.f32.mrf.mxu1 }
 0x1be   :  { %v2904_v48 = vpop.f32.mrf.mxu0 }
 0x1c0   :  { %v2908_v16 = vpop.f32.mrf.mxu0 }
 0x1cf   :  { %v2902_v12 = vpop.f32.mrf.mxu1 }
 0x1d1   :  { %v2906_v61 = vpop.f32.mrf.mxu1 }
 0x1d7   :  { %v2912_v24 = vpop.f32.mrf.mxu0 }
 0x1d9   :  { %v2916_v49 = vpop.f32.mrf.mxu0 }
 0x1e8   :  { %v2910_v5 = vpop.f32.mrf.mxu1 }
 0x1ea   :  { %v2914_v47 = vpop.f32.mrf.mxu1 }
 0x1eb   :  { %3131 = vst [vmem:[#allocation2_spill] sm:$0xff] %v2914_v47 }
 0x1f0   :  { %v2920_v36 = vpop.f32.mrf.mxu0 }
 0x1f2   :  { %v2924_v0 = vpop.f32.mrf.mxu0 }
 0x207   :  { %v2918_v29 = vpop.f32.mrf.mxu1 }
 0x208   :  { %3132 = vst [vmem:[#allocation3_spill] sm:$0xff] %v2918_v29 }
 0x209   :  { %v2922_v54 = vpop.f32.mrf.mxu1 }
 0x20a   :  { %3133 = vst [vmem:[#allocation4_spill] sm:$0xff] %v2922_v54  ;;  %v632_v54 = vadd.f32 %v1895_v50, %v2961_v55 }
 0x20b   :  { %v1994_v57 = vpop.f32.mrf.mxu1 }
 0x20d   :  { %v1202_v3 = vpop.f32.mrf.mxu1 }
 0x20f   :  { %v2926_v9 = vpop.f32.mrf.mxu0  ;;  %v2928_v22 = vpop.f32.mrf.mxu1 }
 0x211   :  { %v2930_v27 = vpop.f32.mrf.mxu0  ;;  %v2932_v32 = vpop.f32.mrf.mxu1 }
 0x212   :  { %3134 = vst [vmem:[#allocation5_spill] sm:$0xff] %v2930_v27  ;;  %v866_v27 = vadd.f32 %v2878_v40, %v632_v54 }
 0x213   :  { %v1960_v7 = vpop.f32.mrf.mxu0  ;;  %v2934_v43 = vpop.f32.mrf.mxu1 }
 0x215   :  { %v1019_v10 = vpop.f32.mrf.mxu0  ;;  %v2936_v38 = vpop.f32.mrf.mxu1 }
 0x217   :  { %v1963_v45 = vpop.f32.mrf.mxu0  ;;  %v2938_v53 = vpop.f32.mrf.mxu1 }
 0x219   :  { %v1033_v6 = vpop.f32.mrf.mxu0  ;;  %v2940_v51 = vpop.f32.mrf.mxu1 }
 0x21b   :  { %v1966_v39 = vpop.f32.mrf.mxu0  ;;  %v2942_v58 = vpop.f32.mrf.mxu1 }
 0x21d   :  { %v1047_v41 = vpop.f32.mrf.mxu0  ;;  %v2944_v42 = vpop.f32.mrf.mxu1 }
 0x21f   :  { %v2946_v56 = vpop.f32.mrf.mxu0  ;;  %v2948_v18 = vpop.f32.mrf.mxu1 }
 0x220   :  { %3135 = vst [vmem:[#allocation6_spill] sm:$0xff] %v2948_v18  ;;  %v1069_v21 = vadd.f32 %v2946_v56, %v890_v13 }
 0x221   :  { %v2950_v26 = vpop.f32.mrf.mxu0  ;;  %v2952_v2 = vpop.f32.mrf.mxu1 }
 0x222   :  { %3136 = vst [vmem:[#allocation7_spill] sm:$0xff] %v2952_v2  ;;  %v854_v2 = vadd.f32 %v2874_v35, %v612_v20  ;;  %v642_v35 = vadd.f32 %v2961_v55, %v2892_v63  ;;  %v662_v63 = vadd.f32 %v2961_v55, %v2900_v15 }
 0x223   :  { %v2954_v19 = vpop.f32.mrf.mxu0  ;;  %v2956_v52 = vpop.f32.mrf.mxu1 }
 0x224   :  { %3137 = vst [vmem:[#allocation8_spill] sm:$0xff] %v2956_v52  ;;  %v1027_v18 = vadd.f32 %v1960_v7, %v854_v2  ;;  %v872_v54 = vadd.f32 %v2884_v31, %v642_v35 }
 0x225   :  { %v2963_v59 = vpop.f32.mrf.mxu0  ;;  %v2965_v33 = vpop.f32.mrf.mxu1 }
 0x226   :  { %3138 = vst [vmem:[#allocation9_spill] sm:$0xff] %v2965_v33  ;;  %v1211_v7 = vadd.f32 %v1994_v57, %v1027_v18 }
 0x227   :  { %v2967_v34 = vpop.f32.mrf.mxu0  ;;  %v2969_v17 = vpop.f32.mrf.mxu1 }
 0x228   :  { %3139 = vst [vmem:[#allocation10_spill] sm:$0xff] %v2969_v17  ;;  %v622_v17 = vadd.f32 %v2961_v55, %v621_v46 }
 0x229   :  { %v2972_v23 = vpop.f32.mrf.mxu0  ;;  %v2974_v25 = vpop.f32.mrf.mxu1 }
 0x22a   :  { %3140 = vst [vmem:[#allocation11_spill] sm:$0xff] %v2974_v25  ;;  %v860_v46 = vadd.f32 %v2880_v8, %v622_v17  ;;  %v1055_v8 = vadd.f32 %v1966_v39, %v878_v60 }
 0x22b   :  { %v2977_v30 = vpop.f32.mrf.mxu0  ;;  %v2062_v52 = vpop.f32.mrf.mxu1 }
 0x22c   :  { %3141 = vst [vmem:[#allocation12_spill] sm:$0xff] %v2977_v30  ;;  %v1020_v30 = vadd.f32 %v1019_v10, %v848_v44 }
 0x22d   :  { %v2981_v33 = vpop.f32.mrf.mxu0  ;;  %v1574_v29 = vpop.f32.mrf.mxu1 }
 0x22e   :  { %3142 = vst [vmem:[#allocation13_spill] sm:$0xff] %v2981_v33  ;;  %v1041_v33 = vadd.f32 %v1963_v45, %v866_v27  ;;  %v1203_v40 = vadd.f32 %v1202_v3, %v1020_v30  ;;  %v1048_v30 = vadd.f32 %v1047_v41, %v872_v54 }
 0x22f   :  { %v2985_v47 = vpop.f32.mrf.mxu0  ;;  %v2065_v25 = vpop.f32.mrf.mxu1 }
 0x230   :  { %3143 = vst [vmem:[#allocation14_spill] sm:$0xff] %v2985_v47  ;;  %v1034_v47 = vadd.f32 %v1033_v6, %v860_v46  ;;  %v1227_v14 = vadd.f32 %v2928_v22, %v1041_v33  ;;  %v692_v6 = vadd.f32 %v2904_v48, %v2961_v55  ;;  %v682_v22 = vadd.f32 %v2961_v55, %v2908_v16 }
 0x231   :  { %v2992_v50 = vpop.f32.mrf.mxu0  ;;  %v1586_v20 = vpop.f32.mrf.mxu1 }
 0x232   :  { %v1219_v39 = vadd.f32 %v2932_v32, %v1034_v47  ;;  %v712_v47 = vadd.f32 %v2912_v24, %v2961_v55  ;;  %v902_v16 = vadd.f32 %v2894_v4, %v692_v6  ;;  %v896_v24 = vadd.f32 %v2898_v1, %v682_v22 }
 0x233   :  { %v2028_v2 = vpop.f32.mrf.mxu0  ;;  %v2068_v28 = vpop.f32.mrf.mxu1 }
 0x234   :  { %v1415_v10 = vadd.f32 %v2028_v2, %v1211_v7  ;;  %v1083_v7 = vadd.f32 %v2954_v19, %v902_v16  ;;  %v1076_v60 = vadd.f32 %v2963_v59, %v896_v24 }
 0x235   :  { %v1408_v27 = vpop.f32.mrf.mxu0  ;;  %v1598_v45 = vpop.f32.mrf.mxu1  ;;  %v3149_v22 = vld [vmem:[#allocation13_spill] sm:$0xff] }
 0x236   :  { %v1581_v57 = vadd.f32 %v2062_v52, %v1415_v10  ;;  %v1409_v18 = vadd.f32 %v1408_v27, %v1203_v40  ;;  %v884_v52 = vadd.f32 %v2890_v62, %v662_v63  ;;  %v1275_v54 = vadd.f32 %v2942_v58, %v1083_v7 }
 0x237   :  { %v2031_v17 = vpop.f32.mrf.mxu0  ;;  %v2071_v3 = vpop.f32.mrf.mxu1 }
 0x238   :  { %1670 = vst.msk [vmem:[%s3118_s3 + $0x8] sm:$0xff] %vm1668_vm4, %v1581_v57  ;;  %v1575_v31 = vadd.f32 %v1574_v29, %v1409_v18  ;;  %v1427_v15 = vadd.f32 %v2031_v17, %v1227_v14  ;;  %v1243_v29 = vadd.f32 %v2934_v43, %v1055_v8  ;;  %v1062_v11 = vadd.f32 %v2950_v26, %v884_v52  ;;  %v3144_v18 = vld [vmem:[#allocation5_spill] sm:$0xff]  ;;  %v3145_v14 = vld [vmem:[#allocation2_spill] sm:$0xff] }
 0x239   :  { %v1420_v48 = vpop.f32.mrf.mxu0  ;;  %v1610_v33 = vpop.f32.mrf.mxu1  ;;  %v702_v43 = vadd.f32 %v2961_v55, %v2916_v49  ;;  %v914_v49 = vadd.f32 %v2902_v12, %v712_v47  ;;  %v1267_v57 = vadd.f32 %v2944_v42, %v1076_v60  ;;  %v742_v58 = vadd.f32 %v2961_v55, %v3144_v18  ;;  %v3152_v47 = vld [vmem:[#allocation14_spill] sm:$0xff] }
 0x23a   :  { %1669 = vst.msk [vmem:[%s3118_s3] sm:$0xff] %vm1668_vm4, %v1575_v31  ;;  %v1593_v41 = vadd.f32 %v2065_v25, %v1427_v15  ;;  %v1421_v44 = vadd.f32 %v1420_v48, %v1219_v39  ;;  %v1235_v25 = vadd.f32 %v2936_v38, %v1048_v30  ;;  %v732_v38 = vadd.f32 %v2920_v36, %v2961_v55  ;;  %v3148_v31 = vld [vmem:[#allocation3_spill] sm:$0xff] }
 0x23b   :  { %v2034_v32 = vpop.f32.mrf.mxu0  ;;  %v2074_v62 = vpop.f32.mrf.mxu1  ;;  %v908_v36 = vadd.f32 %v2906_v61, %v702_v43  ;;  %v1097_v12 = vadd.f32 %v2967_v34, %v914_v49 }
 0x23c   :  { %1672 = vst.msk [vmem:[%s3118_s3 + $0x18] sm:$0xff] %vm1668_vm4, %v1593_v41  ;;  %v1587_v56 = vadd.f32 %v1586_v20, %v1421_v44  ;;  %v1439_v35 = vadd.f32 %v2034_v32, %v1243_v29  ;;  %v1259_v20 = vadd.f32 %v2938_v53, %v1069_v21  ;;  %v722_v53 = vadd.f32 %v2961_v55, %v2924_v0  ;;  %v3151_v41 = vld [vmem:[#allocation4_spill] sm:$0xff] }
 0x23d   :  { %v1432_v46 = vpop.f32.mrf.mxu0  ;;  %v1622_v4 = vpop.f32.mrf.mxu1  ;;  %v926_v27 = vadd.f32 %v2910_v5, %v732_v38  ;;  %v1090_v61 = vadd.f32 %v2972_v23, %v908_v36  ;;  %v3146_v5 = vld [vmem:[#allocation12_spill] sm:$0xff]  ;;  %v932_v44 = vadd.f32 %v3151_v41, %v742_v58  ;;  %v3155_v38 = vld [vmem:[#allocation10_spill] sm:$0xff] }
 0x23e   :  { %1671 = vst.msk [vmem:[%s3118_s3 + $0x10] sm:$0xff] %vm1668_vm4, %v1587_v56  ;;  %v1605_v26 = vadd.f32 %v2068_v28, %v1439_v35  ;;  %v1433_v37 = vadd.f32 %v1432_v46, %v1235_v25  ;;  %v1251_v28 = vadd.f32 %v2940_v51, %v1062_v11  ;;  %v752_v51 = vadd.f32 %v2926_v9, %v2961_v55  ;;  %v3153_v11 = vld [vmem:[#allocation8_spill] sm:$0xff] }
 0x23f   :  { %v2037_v2 = vpop.f32.mrf.mxu0  ;;  %v2077_v1 = vpop.f32.mrf.mxu1  ;;  %v920_v9 = vadd.f32 %v3145_v14, %v722_v53  ;;  %v1111_v13 = vadd.f32 %v3146_v5, %v926_v27  ;;  %v1118_v43 = vadd.f32 %v2992_v50, %v932_v44 }
 0x240   :  { %1674 = vst.msk [vmem:[%s3118_s3 + $0x28] sm:$0xff] %vm1668_vm4, %v1605_v26  ;;  %v1599_v19 = vadd.f32 %v1598_v45, %v1433_v37  ;;  %v1451_v10 = vadd.f32 %v2037_v2, %v1259_v20  ;;  %v938_v15 = vadd.f32 %v3148_v31, %v752_v51 }
 0x241   :  { %v1444_v40 = vpop.f32.mrf.mxu0  ;;  %v1634_v0 = vpop.f32.mrf.mxu1  ;;  %v1104_v55 = vadd.f32 %v3149_v22, %v920_v9  ;;  %v1307_v56 = vadd.f32 %v3153_v11, %v1111_v13 }
 0x242   :  { %1673 = vst.msk [vmem:[%s3118_s3 + $0x20] sm:$0xff] %vm1668_vm4, %v1599_v19  ;;  %v1617_v59 = vadd.f32 %v2071_v3, %v1451_v10  ;;  %v1445_v63 = vadd.f32 %v1444_v40, %v1251_v28  ;;  %v3147_v3 = vld [vmem:[#allocation6_spill] sm:$0xff]  ;;  %v1125_v16 = vadd.f32 %v3152_v47, %v938_v15  ;;  %v3156_v19 = vld [vmem:[#allocation11_spill] sm:$0xff] }
 0x243   :  { %v2040_v45 = vpop.f32.mrf.mxu0  ;;  %v1291_v30 = vadd.f32 %v3147_v3, %v1097_v12  ;;  %v2080_v42 = vpop.f32.mrf.mxu1  ;;  %v1315_v10 = vadd.f32 %v3156_v19, %v1118_v43 }
 0x244   :  { %1676 = vst.msk [vmem:[%s3118_s3 + $0x38] sm:$0xff] %vm1668_vm4, %v1617_v59  ;;  %v1611_v34 = vadd.f32 %v1610_v33, %v1445_v63  ;;  %v1463_v8 = vadd.f32 %v2040_v45, %v1275_v54  ;;  %v3150_v33 = vld [vmem:[#allocation7_spill] sm:$0xff]  ;;  %v1323_v49 = vadd.f32 %v3155_v38, %v1125_v16 }
 0x245   :  { %v1456_v6 = vpop.f32.mrf.mxu0  ;;  %v1283_v21 = vadd.f32 %v3150_v33, %v1090_v61  ;;  %v1646_v35 = vpop.f32.mrf.mxu1 }
 0x246   :  { %1675 = vst.msk [vmem:[%s3118_s3 + $0x30] sm:$0xff] %vm1668_vm4, %v1611_v34  ;;  %v1629_v23 = vadd.f32 %v2074_v62, %v1463_v8  ;;  %v1457_v17 = vadd.f32 %v1456_v6, %v1267_v57 }
 0x247   :  { %v2043_v39 = vpop.f32.mrf.mxu0  ;;  %v2083_v50 = vpop.f32.mrf.mxu1 }
 0x248   :  { %1678 = vst.msk [vmem:[%s3118_s3 + $0x48] sm:$0xff] %vm1668_vm4, %v1629_v23  ;;  %v1623_v52 = vadd.f32 %v1622_v4, %v1457_v17  ;;  %v1475_v48 = vadd.f32 %v2043_v39, %v1291_v30  ;;  %v3154_v4 = vld [vmem:[#allocation9_spill] sm:$0xff] }
 0x249   :  { %v1468_v29 = vpop.f32.mrf.mxu0  ;;  %v1299_v7 = vadd.f32 %v3154_v4, %v1104_v55  ;;  %v1658_v40 = vpop.f32.mrf.mxu1 }
 0x24a   :  { %1677 = vst.msk [vmem:[%s3118_s3 + $0x40] sm:$0xff] %vm1668_vm4, %v1623_v52  ;;  %v1641_v32 = vadd.f32 %v2077_v1, %v1475_v48  ;;  %v1469_v62 = vadd.f32 %v1468_v29, %v1283_v21 }
 0x24b   :  { %v2046_v25 = vpop.f32.mrf.mxu0 }
 0x24c   :  { %1680 = vst.msk [vmem:[%s3118_s3 + $0x58] sm:$0xff] %vm1668_vm4, %v1641_v32  ;;  %v1635_v24 = vadd.f32 %v1634_v0, %v1469_v62  ;;  %v1487_v46 = vadd.f32 %v2046_v25, %v1307_v56 }
 0x24d   :  { %v1480_v26 = vpop.f32.mrf.mxu0 }
 0x24e   :  { %1679 = vst.msk [vmem:[%s3118_s3 + $0x50] sm:$0xff] %vm1668_vm4, %v1635_v24  ;;  %v1653_v37 = vadd.f32 %v2080_v42, %v1487_v46  ;;  %v1481_v20 = vadd.f32 %v1480_v26, %v1299_v7 }
 0x24f   :  { %v2049_v2 = vpop.f32.mrf.mxu0 }
 0x250   :  { %1682 = vst.msk [vmem:[%s3118_s3 + $0x68] sm:$0xff] %vm1668_vm4, %v1653_v37  ;;  %v1647_v1 = vadd.f32 %v1646_v35, %v1481_v20  ;;  %v1499_v60 = vadd.f32 %v2049_v2, %v1323_v49 }
 0x251   :  { %v1492_v28 = vpop.f32.mrf.mxu0 }
 0x252   :  { %1681 = vst.msk [vmem:[%s3118_s3 + $0x60] sm:$0xff] %vm1668_vm4, %v1647_v1  ;;  %v1665_v53 = vadd.f32 %v2083_v50, %v1499_v60  ;;  %v1493_v36 = vadd.f32 %v1492_v28, %v1315_v10 }
 0x254   :  { %1684 = vst.msk [vmem:[%s3118_s3 + $0x78] sm:$0xff] %vm1668_vm4, %v1665_v53  ;;  %v1659_v12 = vadd.f32 %v1658_v40, %v1493_v36 }
 0x256   :  { %1683 = vst.msk [vmem:[%s3118_s3 + $0x70] sm:$0xff] %vm1668_vm4, %v1659_v12 }

</bundles_post_ra>
